<compile_context>
chip_gen: v7x
topology: tpu7x:2x2x1
jax: 0.10.0
libtpu: 0.0.40
codegen_flags: <defaults>
</compile_context>

<pallas_src>
import functools

import jax
import jax.numpy as jnp
import numpy as np
from jax import lax
from jax.experimental import pallas as pl
from jax.experimental.pallas import tpu as pltpu


# ---------------------------------------------------------------------------
# XLA glue (pure data movement)
# ---------------------------------------------------------------------------
def patchify(t, p):
    """Rearrange 'b c (n1 s1) (n2 s2) -> b (n1 n2) (c s1 s2)'."""
    B, C, H, W = t.shape
    n1, n2 = H // p, W // p
    t = t.reshape(B, C, n1, p, n2, p)
    t = jnp.transpose(t, (0, 2, 4, 1, 3, 5))          # (B, n1, n2, C, s1, s2)
    return t.reshape(B, n1 * n2, C * p * p)


def build_im2col(cond, patch_size, ksize=3):
    """Replication-pad + im2col with PATCH-MAJOR columns.

    Returns (B, 9*C, N*p*p) bf16 where
      col[b, (dy*3+dx)*C + ci, n*p*p + s1*p + s2]
        = cond_pad[b, ci, n1*p + s1 + dy, n2*p + s2 + dx].
    """
    B, C, H, W = cond.shape
    p = patch_size
    pad = ksize // 2
    n1, n2 = H // p, W // p
    xpad = jnp.pad(cond, ((0, 0), (0, 0), (pad, pad), (pad, pad)), mode="edge")
    shifted = jnp.stack(
        [xpad[:, :, dy:dy + H, dx:dx + W] for dy in range(ksize) for dx in range(ksize)],
        axis=1)                                        # (B, 9, C, H, W)
    shifted = shifted.reshape(B, ksize * ksize * C, n1, p, n2, p)
    shifted = jnp.transpose(shifted, (0, 1, 2, 4, 3, 5))   # (B, 9C, n1, n2, p, p)
    col = shifted.reshape(B, ksize * ksize * C, n1 * n2 * p * p)
    return col.astype(jnp.bfloat16)


def prepare_params(params, *, patch_size):
    """One-time repack of PyTorch-layout params into kernel layout/dtype."""
    wq, bq, wc, bc = params["wq"], params["bq"], params["wc"], params["bc"]
    Hs = wq.shape[0]
    Cout, Cin, kh, kw = wc.shape
    pp = patch_size * patch_size
    # conv weight as matmul with rows matching the im2col row order (dy, dx, ci)
    wc_mat = jnp.transpose(wc, (0, 2, 3, 1)).reshape(Cout, kh * kw * Cin)
    # conv bias in the patchified (co*pp + s) feature order
    bkv = jnp.repeat(bc, pp).reshape(1, Cout * pp)
    return {
        "wq_t": wq.T.astype(jnp.bfloat16),             # (Hs, Hs)  (in, out)
        "bq": bq.reshape(1, Hs).astype(jnp.float32),   # (1, Hs)
        "wc_mat": wc_mat.astype(jnp.bfloat16),         # (2C, 9C)
        "bkv": bkv.astype(jnp.float32),                # (1, 2*Hs)
    }


def _pick_block_b(B):
    """Pack batch rows per grid step, but keep >=2 parallel steps (v7x: 2 TCs)."""
    if B <= 2:
        return 1
    for bb in range(B // 2, 0, -1):
        if B % bb == 0:
            return bb
    return 1


# ---------------------------------------------------------------------------
# Fused kernel: kv_conv (matmul) + q_linear + multi-head attention
# ---------------------------------------------------------------------------
def _fused_kernel(x_ref, col_ref, wq_ref, bq_ref, wc_ref, bkv_ref, o_ref,
                  *, num_heads, scale):
    # x_ref  : (Bb, N, Hs)     bf16  patchified query input
    # col_ref: (Bb, 9C, N*pp)  bf16  im2col columns (patch-major)
    # wq_ref : (Hs, Hs)        bf16  q_linear weight (in, out)
    # bq_ref : (1, Hs)         f32
    # wc_ref : (2C, 9C)        bf16  conv weight as matmul
    # bkv_ref: (1, 2*Hs)       f32   conv bias in patchified feature order
    # o_ref  : (Bb, N, Hs)     f32   output in (N, head*depth) layout
    Bb, N, Hs = o_ref.shape
    Cout = wc_ref.shape[0]                 # 2*C
    pp = (2 * Hs) // Cout                  # patch_size ** 2
    depth = Hs // num_heads

    # ---- q_linear for every row in the block (M = Bb*N rows on the MXU) ----
    xq = x_ref[0] if Bb == 1 else x_ref[...].reshape(Bb * N, Hs)
    q = jnp.dot(xq, wq_ref[...], preferred_element_type=jnp.float32) + bq_ref[...]
    q = q.astype(jnp.bfloat16)

    for bb in range(Bb):                   # static unroll (Bb is small)
        # ---- kv conv as one MXU matmul; result stays in VMEM ----
        kvm = jnp.dot(wc_ref[...], col_ref[bb],
                      preferred_element_type=jnp.float32)        # (2C, N*pp)

        # ---- in-register patchify of the conv result ----
        # kvp[n, co*pp + s] = kvm[co, n*pp + s]; built from 2D slices + concats
        # only (guaranteed-supported relayouts), ~1 KB pieces.
        rows = []
        for n in range(N):
            pieces = [kvm[co:co + 1, n * pp:(n + 1) * pp] for co in range(Cout)]
            rows.append(jnp.concatenate(pieces, axis=1))          # (1, 2*Hs)
        kvp = jnp.concatenate(rows, axis=0) + bkv_ref[...]        # (N, 2*Hs) f32
        kvp = kvp.astype(jnp.bfloat16)

        qb = q if Bb == 1 else q[bb * N:(bb + 1) * N]             # (N, Hs) bf16

        # ---- multi-head scaled-dot-product attention ----
        for h in range(num_heads):         # 128-lane aligned head slices
            lo = h * depth
            qh = qb[:, lo:lo + depth]
            kh = kvp[:, lo:lo + depth]
            vh = kvp[:, Hs + lo:Hs + lo + depth]
            s = lax.dot_general(qh, kh, (((1,), (1,)), ((), ())),
                                preferred_element_type=jnp.float32) * scale
            s = s - jnp.max(s, axis=-1, keepdims=True)
            pexp = jnp.exp(s)
            denom = jnp.sum(pexp, axis=-1, keepdims=True)
            ctx = jnp.dot(pexp.astype(jnp.bfloat16), vh,
                          preferred_element_type=jnp.float32)
            o_ref[bb, :, lo:lo + depth] = (
                ctx * pl.reciprocal(denom, approx=True)).astype(o_ref.dtype)


# ---------------------------------------------------------------------------
# Cross_MultiAttention forward
# ---------------------------------------------------------------------------
def cross_multi_attention_forward(x, cond, kparams, *, num_heads, patch_size,
                                  block_b=None):
    B, C, H, W = x.shape
    p = patch_size
    Hs = C * p * p
    N = (H // p) * (W // p)
    NPP = N * p * p
    K = 9 * C
    Cout = 2 * C
    assert Hs % num_heads == 0
    scale = float(Hs) ** (-0.5)

    x_reg = patchify(x, p).astype(jnp.bfloat16)        # (B, N, Hs)   bf16
    col = build_im2col(cond, p)                        # (B, 9C, NPP) bf16

    if block_b is None:
        block_b = _pick_block_b(B)
    assert B % block_b == 0
    num_blocks = B // block_b

    depth = Hs // num_heads
    flops = B * (2 * N * Hs * Hs                       # q_linear
                 + 2 * Cout * K * NPP                  # kv conv
                 + num_heads * 4 * N * N * depth)      # QK^T + PV
    transcendentals = B * num_heads * N * N
    bytes_accessed = (
        x_reg.size * 2 + col.size * 2
        + kparams["wq_t"].size * 2 + kparams["wc_mat"].size * 2
        + kparams["bq"].size * 4 + kparams["bkv"].size * 4
        + B * N * Hs * 4)

    kern = functools.partial(_fused_kernel, num_heads=num_heads, scale=scale)
    out = pl.pallas_call(
        kern,
        out_shape=jax.ShapeDtypeStruct((B, N, Hs), jnp.float32),
        grid=(num_blocks,),
        in_specs=[
            pl.BlockSpec((block_b, N, Hs), lambda i: (i, 0, 0)),    # x_reg
            pl.BlockSpec((block_b, K, NPP), lambda i: (i, 0, 0)),   # im2col cols
            pl.BlockSpec((Hs, Hs), lambda i: (0, 0)),               # wq_t
            pl.BlockSpec((1, Hs), lambda i: (0, 0)),                # bq
            pl.BlockSpec((Cout, K), lambda i: (0, 0)),              # wc_mat
            pl.BlockSpec((1, 2 * Hs), lambda i: (0, 0)),            # bkv
        ],
        out_specs=pl.BlockSpec((block_b, N, Hs), lambda i: (i, 0, 0)),
        compiler_params=pltpu.CompilerParams(dimension_semantics=("parallel",)),
        cost_estimate=pl.CostEstimate(flops=flops,
                                      transcendentals=transcendentals,
                                      bytes_accessed=bytes_accessed),
    )(x_reg, col, kparams["wq_t"], kparams["bq"], kparams["wc_mat"], kparams["bkv"])

    # PyTorch: x.transpose(1, 2).reshape(b, -1, h, w).  Our buffer is already
    # the contiguous (B, N, heads, depth) layout, so a flat reshape reproduces
    # the same element order (the transpose only undid the head-major view).
    return out.reshape(B, C, H, W)


# ---------------------------------------------------------------------------
# Pure-JAX reference (HIGHEST precision) for the correctness check
# ---------------------------------------------------------------------------
def reference_forward(x, cond, params, *, num_heads, patch_size):
    B, C, H, W = x.shape
    p = patch_size
    Hs = C * p * p
    depth = Hs // num_heads
    scale = float(Hs) ** (-0.5)

    xr = patchify(x, p)
    q = jnp.einsum("bnk,ok->bno", xr, params["wq"],
                   precision=lax.Precision.HIGHEST) + params["bq"]

    condp = jnp.pad(cond, ((0, 0), (0, 0), (1, 1), (1, 1)), mode="edge")
    kvc = lax.conv_general_dilated(
        condp, params["wc"], (1, 1), "VALID",
        dimension_numbers=("NCHW", "OIHW", "NCHW"),
        precision=lax.Precision.HIGHEST,
    ) + params["bc"][None, :, None, None]
    kv = patchify(kvc, p)
    k, v = kv[..., :Hs], kv[..., Hs:]

    def split_heads(t):
        return t.reshape(B, -1, num_heads, depth).transpose(0, 2, 1, 3)

    qh, kh, vh = split_heads(q), split_heads(k), split_heads(v)
    s = jnp.einsum("bhnd,bhmd->bhnm", qh, kh,
                   precision=lax.Precision.HIGHEST) * scale
    a = jax.nn.softmax(s, axis=-1)
    o = jnp.einsum("bhnm,bhmd->bhnd", a, vh,
                   precision=lax.Precision.HIGHEST)
    return o.transpose(0, 2, 1, 3).reshape(B, -1, H, W)


# ---------------------------------------------------------------------------
if __name__ == "__main__":
    # Module config: hidden_channels=4, patch_size=8, num_heads=2, 16x16 images
    # -> hidden_size = 256 (lane-dense), N = 4 patches, depth = 128.
    B = 2
    hidden_channels = 4
    patch_size = 8
    num_heads = 2
    img_size = 16
    Hs = hidden_channels * patch_size * patch_size      # 256

    key = jax.random.PRNGKey(0)
    kx, kc, k1, k2, k3, k4 = jax.random.split(key, 6)

    x = jax.random.normal(kx, (B, hidden_channels, img_size, img_size), jnp.float32)
    cond = jax.random.normal(kc, (B, hidden_channels, img_size, img_size), jnp.float32)

    params = {
        # nn.Linear(hidden_size, hidden_size): weight is (out, in)
        "wq": 0.05 * jax.random.normal(k1, (Hs, Hs), jnp.float32),
        "bq": 0.05 * jax.random.normal(k2, (Hs,), jnp.float32),
        # conv3x3(hidden_channels, 2*hidden_channels)
        "wc": 0.1 * jax.random.normal(
            k3, (2 * hidden_channels, hidden_channels, 3, 3), jnp.float32),
        "bc": 0.1 * jax.random.normal(k4, (2 * hidden_channels,), jnp.float32),
    }
    kparams = prepare_params(params, patch_size=patch_size)

    fwd = jax.jit(functools.partial(cross_multi_attention_forward,
                                    num_heads=num_heads, patch_size=patch_size))
    out = jax.block_until_ready(fwd(x, cond, kparams))

    assert out.shape == (B, hidden_channels, img_size, img_size), out.shape
    assert bool(jnp.all(jnp.isfinite(out)))

    ref = jax.block_until_ready(
        reference_forward(x, cond, params, num_heads=num_heads, patch_size=patch_size))
    np.testing.assert_allclose(np.asarray(out), np.asarray(ref), atol=5e-2, rtol=5e-2)

    print("KERNEL_OK")
</pallas_src>

<mosaic_0001>
module attributes {stable_mosaic.version = 11 : i64} {
  func.func @_fused_kernel(%arg0: i32, %arg1: memref<1x4x256xbf16, #tpu.memory_space<vmem>>, %arg2: memref<1x36x256xbf16, #tpu.memory_space<vmem>>, %arg3: memref<256x256xbf16, #tpu.memory_space<vmem>>, %arg4: memref<1x256xf32, #tpu.memory_space<vmem>>, %arg5: memref<8x36xbf16, #tpu.memory_space<vmem>>, %arg6: memref<1x512xf32, #tpu.memory_space<vmem>>, %arg7: memref<1x4x256xf32, #tpu.memory_space<vmem>>) attributes {dimension_semantics = [#tpu.dimension_semantics<parallel>], iteration_bounds = array<i64: 2>, scalar_prefetch = 0 : i64, scratch_operands = 0 : i64, tpu.core_type = #tpu.core_type<tc>, window_params = [{transform_indices = @transform_0, window_bounds = array<i64: 1, 4, 256>}, {transform_indices = @transform_1, window_bounds = array<i64: 1, 36, 256>}, {pipeline_mode = #tpu.pipeline_mode<synchronous>, transform_indices = @transform_2, window_bounds = array<i64: 256, 256>}, {pipeline_mode = #tpu.pipeline_mode<synchronous>, transform_indices = @transform_3, window_bounds = array<i64: 1, 256>}, {pipeline_mode = #tpu.pipeline_mode<synchronous>, transform_indices = @transform_4, window_bounds = array<i64: 8, 36>}, {pipeline_mode = #tpu.pipeline_mode<synchronous>, transform_indices = @transform_5, window_bounds = array<i64: 1, 512>}, {transform_indices = @transform_6, window_bounds = array<i64: 1, 4, 256>}]} {
    %c0 = arith.constant 0 : index
    %c0_0 = arith.constant 0 : index
    %c0_1 = arith.constant 0 : index
    %0 = vector.load %arg1[%c0, %c0_0, %c0_1] : memref<1x4x256xbf16, #tpu.memory_space<vmem>>, vector<1x4x256xbf16>
    %1 = vector.shape_cast %0 : vector<1x4x256xbf16> to vector<4x256xbf16>
    %c0_2 = arith.constant 0 : index
    %c0_3 = arith.constant 0 : index
    %2 = vector.load %arg3[%c0_2, %c0_3] : memref<256x256xbf16, #tpu.memory_space<vmem>>, vector<256x256xbf16>
    %cst = arith.constant dense<0.000000e+00> : vector<4x256xf32>
    %3 = tpu.matmul %1, %2, %cst {dimension_numbers = #tpu.dot_dimension_numbers<[1], [0], [0], [1], [0, 0, 1, 1], [], []>} : vector<4x256xbf16>, vector<256x256xbf16>, vector<4x256xf32> -> vector<4x256xf32>
    %c0_4 = arith.constant 0 : index
    %c0_5 = arith.constant 0 : index
    %4 = vector.load %arg4[%c0_4, %c0_5] : memref<1x256xf32, #tpu.memory_space<vmem>>, vector<1x256xf32>
    %5 = vector.broadcast %4 : vector<1x256xf32> to vector<4x256xf32>
    %6 = arith.addf %3, %5 : vector<4x256xf32>
    %7 = arith.truncf %6 : vector<4x256xf32> to vector<4x256xbf16>
    %c0_6 = arith.constant 0 : index
    %c0_7 = arith.constant 0 : index
    %8 = vector.load %arg5[%c0_6, %c0_7] : memref<8x36xbf16, #tpu.memory_space<vmem>>, vector<8x36xbf16>
    %c0_8 = arith.constant 0 : index
    %c0_9 = arith.constant 0 : index
    %c0_10 = arith.constant 0 : index
    %9 = vector.load %arg2[%c0_8, %c0_9, %c0_10] : memref<1x36x256xbf16, #tpu.memory_space<vmem>>, vector<1x36x256xbf16>
    %10 = vector.shape_cast %9 : vector<1x36x256xbf16> to vector<36x256xbf16>
    %cst_11 = arith.constant dense<0.000000e+00> : vector<8x256xf32>
    %11 = tpu.matmul %8, %10, %cst_11 {dimension_numbers = #tpu.dot_dimension_numbers<[1], [0], [0], [1], [0, 0, 1, 1], [], []>} : vector<8x36xbf16>, vector<36x256xbf16>, vector<8x256xf32> -> vector<8x256xf32>
    %12 = vector.extract_strided_slice %11 {offsets = [0, 0], sizes = [1, 64], strides = [1, 1]} : vector<8x256xf32> to vector<1x64xf32>
    %13 = vector.extract_strided_slice %11 {offsets = [1, 0], sizes = [1, 64], strides = [1, 1]} : vector<8x256xf32> to vector<1x64xf32>
    %14 = vector.extract_strided_slice %11 {offsets = [2, 0], sizes = [1, 64], strides = [1, 1]} : vector<8x256xf32> to vector<1x64xf32>
    %15 = vector.extract_strided_slice %11 {offsets = [3, 0], sizes = [1, 64], strides = [1, 1]} : vector<8x256xf32> to vector<1x64xf32>
    %16 = vector.extract_strided_slice %11 {offsets = [4, 0], sizes = [1, 64], strides = [1, 1]} : vector<8x256xf32> to vector<1x64xf32>
    %17 = vector.extract_strided_slice %11 {offsets = [5, 0], sizes = [1, 64], strides = [1, 1]} : vector<8x256xf32> to vector<1x64xf32>
    %18 = vector.extract_strided_slice %11 {offsets = [6, 0], sizes = [1, 64], strides = [1, 1]} : vector<8x256xf32> to vector<1x64xf32>
    %19 = vector.extract_strided_slice %11 {offsets = [7, 0], sizes = [1, 64], strides = [1, 1]} : vector<8x256xf32> to vector<1x64xf32>
    %20 = tpu.concatenate %12, %13, %14, %15, %16, %17, %18, %19 in 1 : vector<1x64xf32>, vector<1x64xf32>, vector<1x64xf32>, vector<1x64xf32>, vector<1x64xf32>, vector<1x64xf32>, vector<1x64xf32>, vector<1x64xf32> -> vector<1x512xf32>
    %21 = vector.extract_strided_slice %11 {offsets = [0, 64], sizes = [1, 64], strides = [1, 1]} : vector<8x256xf32> to vector<1x64xf32>
    %22 = vector.extract_strided_slice %11 {offsets = [1, 64], sizes = [1, 64], strides = [1, 1]} : vector<8x256xf32> to vector<1x64xf32>
    %23 = vector.extract_strided_slice %11 {offsets = [2, 64], sizes = [1, 64], strides = [1, 1]} : vector<8x256xf32> to vector<1x64xf32>
    %24 = vector.extract_strided_slice %11 {offsets = [3, 64], sizes = [1, 64], strides = [1, 1]} : vector<8x256xf32> to vector<1x64xf32>
    %25 = vector.extract_strided_slice %11 {offsets = [4, 64], sizes = [1, 64], strides = [1, 1]} : vector<8x256xf32> to vector<1x64xf32>
    %26 = vector.extract_strided_slice %11 {offsets = [5, 64], sizes = [1, 64], strides = [1, 1]} : vector<8x256xf32> to vector<1x64xf32>
    %27 = vector.extract_strided_slice %11 {offsets = [6, 64], sizes = [1, 64], strides = [1, 1]} : vector<8x256xf32> to vector<1x64xf32>
    %28 = vector.extract_strided_slice %11 {offsets = [7, 64], sizes = [1, 64], strides = [1, 1]} : vector<8x256xf32> to vector<1x64xf32>
    %29 = tpu.concatenate %21, %22, %23, %24, %25, %26, %27, %28 in 1 : vector<1x64xf32>, vector<1x64xf32>, vector<1x64xf32>, vector<1x64xf32>, vector<1x64xf32>, vector<1x64xf32>, vector<1x64xf32>, vector<1x64xf32> -> vector<1x512xf32>
    %30 = vector.extract_strided_slice %11 {offsets = [0, 128], sizes = [1, 64], strides = [1, 1]} : vector<8x256xf32> to vector<1x64xf32>
    %31 = vector.extract_strided_slice %11 {offsets = [1, 128], sizes = [1, 64], strides = [1, 1]} : vector<8x256xf32> to vector<1x64xf32>
    %32 = vector.extract_strided_slice %11 {offsets = [2, 128], sizes = [1, 64], strides = [1, 1]} : vector<8x256xf32> to vector<1x64xf32>
    %33 = vector.extract_strided_slice %11 {offsets = [3, 128], sizes = [1, 64], strides = [1, 1]} : vector<8x256xf32> to vector<1x64xf32>
    %34 = vector.extract_strided_slice %11 {offsets = [4, 128], sizes = [1, 64], strides = [1, 1]} : vector<8x256xf32> to vector<1x64xf32>
    %35 = vector.extract_strided_slice %11 {offsets = [5, 128], sizes = [1, 64], strides = [1, 1]} : vector<8x256xf32> to vector<1x64xf32>
    %36 = vector.extract_strided_slice %11 {offsets = [6, 128], sizes = [1, 64], strides = [1, 1]} : vector<8x256xf32> to vector<1x64xf32>
    %37 = vector.extract_strided_slice %11 {offsets = [7, 128], sizes = [1, 64], strides = [1, 1]} : vector<8x256xf32> to vector<1x64xf32>
    %38 = tpu.concatenate %30, %31, %32, %33, %34, %35, %36, %37 in 1 : vector<1x64xf32>, vector<1x64xf32>, vector<1x64xf32>, vector<1x64xf32>, vector<1x64xf32>, vector<1x64xf32>, vector<1x64xf32>, vector<1x64xf32> -> vector<1x512xf32>
    %39 = vector.extract_strided_slice %11 {offsets = [0, 192], sizes = [1, 64], strides = [1, 1]} : vector<8x256xf32> to vector<1x64xf32>
    %40 = vector.extract_strided_slice %11 {offsets = [1, 192], sizes = [1, 64], strides = [1, 1]} : vector<8x256xf32> to vector<1x64xf32>
    %41 = vector.extract_strided_slice %11 {offsets = [2, 192], sizes = [1, 64], strides = [1, 1]} : vector<8x256xf32> to vector<1x64xf32>
    %42 = vector.extract_strided_slice %11 {offsets = [3, 192], sizes = [1, 64], strides = [1, 1]} : vector<8x256xf32> to vector<1x64xf32>
    %43 = vector.extract_strided_slice %11 {offsets = [4, 192], sizes = [1, 64], strides = [1, 1]} : vector<8x256xf32> to vector<1x64xf32>
    %44 = vector.extract_strided_slice %11 {offsets = [5, 192], sizes = [1, 64], strides = [1, 1]} : vector<8x256xf32> to vector<1x64xf32>
    %45 = vector.extract_strided_slice %11 {offsets = [6, 192], sizes = [1, 64], strides = [1, 1]} : vector<8x256xf32> to vector<1x64xf32>
    %46 = vector.extract_strided_slice %11 {offsets = [7, 192], sizes = [1, 64], strides = [1, 1]} : vector<8x256xf32> to vector<1x64xf32>
    %47 = tpu.concatenate %39, %40, %41, %42, %43, %44, %45, %46 in 1 : vector<1x64xf32>, vector<1x64xf32>, vector<1x64xf32>, vector<1x64xf32>, vector<1x64xf32>, vector<1x64xf32>, vector<1x64xf32>, vector<1x64xf32> -> vector<1x512xf32>
    %48 = tpu.concatenate %20, %29, %38, %47 in 0 : vector<1x512xf32>, vector<1x512xf32>, vector<1x512xf32>, vector<1x512xf32> -> vector<4x512xf32>
    %c0_12 = arith.constant 0 : index
    %c0_13 = arith.constant 0 : index
    %49 = vector.load %arg6[%c0_12, %c0_13] : memref<1x512xf32, #tpu.memory_space<vmem>>, vector<1x512xf32>
    %50 = vector.broadcast %49 : vector<1x512xf32> to vector<4x512xf32>
    %51 = arith.addf %48, %50 : vector<4x512xf32>
    %52 = arith.truncf %51 : vector<4x512xf32> to vector<4x512xbf16>
    %53 = vector.extract_strided_slice %7 {offsets = [0, 0], sizes = [4, 128], strides = [1, 1]} : vector<4x256xbf16> to vector<4x128xbf16>
    %54 = vector.extract_strided_slice %52 {offsets = [0, 0], sizes = [4, 128], strides = [1, 1]} : vector<4x512xbf16> to vector<4x128xbf16>
    %55 = vector.extract_strided_slice %52 {offsets = [0, 256], sizes = [4, 128], strides = [1, 1]} : vector<4x512xbf16> to vector<4x128xbf16>
    %cst_14 = arith.constant dense<0.000000e+00> : vector<4x4xf32>
    %56 = tpu.matmul %53, %54, %cst_14 {dimension_numbers = #tpu.dot_dimension_numbers<[1], [1], [0], [0], [0, 0, 1, 0], [], []>} : vector<4x128xbf16>, vector<4x128xbf16>, vector<4x4xf32> -> vector<4x4xf32>
    %cst_15 = arith.constant 6.250000e-02 : f32
    %57 = vector.broadcast %cst_15 : f32 to vector<4x4xf32>
    %58 = arith.mulf %56, %57 : vector<4x4xf32>
    %cst_16 = arith.constant dense<0xFF800000> : vector<4xf32>
    %59 = vector.multi_reduction <maximumf>, %58, %cst_16 [1] : vector<4x4xf32> to vector<4xf32>
    %60 = vector.shape_cast %59 : vector<4xf32> to vector<4x1xf32>
    %61 = vector.broadcast %60 : vector<4x1xf32> to vector<4x4xf32>
    %62 = arith.subf %58, %61 : vector<4x4xf32>
    %63 = math.exp %62 : vector<4x4xf32>
    %cst_17 = arith.constant dense<0.000000e+00> : vector<4xf32>
    %64 = vector.multi_reduction <add>, %63, %cst_17 [1] : vector<4x4xf32> to vector<4xf32>
    %65 = vector.shape_cast %64 : vector<4xf32> to vector<4x1xf32>
    %66 = arith.truncf %63 : vector<4x4xf32> to vector<4x4xbf16>
    %cst_18 = arith.constant dense<0.000000e+00> : vector<4x128xf32>
    %67 = tpu.matmul %66, %55, %cst_18 {dimension_numbers = #tpu.dot_dimension_numbers<[1], [0], [0], [1], [0, 0, 1, 1], [], []>} : vector<4x4xbf16>, vector<4x128xbf16>, vector<4x128xf32> -> vector<4x128xf32>
    %68 = tpu.reciprocal %65 {approx = true} : vector<4x1xf32> -> vector<4x1xf32>
    %69 = vector.broadcast %68 : vector<4x1xf32> to vector<4x128xf32>
    %70 = arith.mulf %67, %69 : vector<4x128xf32>
    %c0_19 = arith.constant 0 : index
    %c0_20 = arith.constant 0 : index
    %c0_21 = arith.constant 0 : index
    %71 = vector.load %arg7[%c0_19, %c0_20, %c0_21] : memref<1x4x256xf32, #tpu.memory_space<vmem>>, vector<1x4x128xf32>
    %72 = vector.shape_cast %71 : vector<1x4x128xf32> to vector<4x128xf32>
    %73 = vector.shape_cast %70 : vector<4x128xf32> to vector<1x4x128xf32>
    tpu.vector_store %arg7[%c0_19, %c0_20, %c0_21], %73 {strides = array<i32>} : memref<1x4x256xf32, #tpu.memory_space<vmem>>, vector<1x4x128xf32>,
    %74 = vector.extract_strided_slice %7 {offsets = [0, 128], sizes = [4, 128], strides = [1, 1]} : vector<4x256xbf16> to vector<4x128xbf16>
    %75 = vector.extract_strided_slice %52 {offsets = [0, 128], sizes = [4, 128], strides = [1, 1]} : vector<4x512xbf16> to vector<4x128xbf16>
    %76 = vector.extract_strided_slice %52 {offsets = [0, 384], sizes = [4, 128], strides = [1, 1]} : vector<4x512xbf16> to vector<4x128xbf16>
    %cst_22 = arith.constant dense<0.000000e+00> : vector<4x4xf32>
    %77 = tpu.matmul %74, %75, %cst_22 {dimension_numbers = #tpu.dot_dimension_numbers<[1], [1], [0], [0], [0, 0, 1, 0], [], []>} : vector<4x128xbf16>, vector<4x128xbf16>, vector<4x4xf32> -> vector<4x4xf32>
    %cst_23 = arith.constant 6.250000e-02 : f32
    %78 = vector.broadcast %cst_23 : f32 to vector<4x4xf32>
    %79 = arith.mulf %77, %78 : vector<4x4xf32>
    %cst_24 = arith.constant dense<0xFF800000> : vector<4xf32>
    %80 = vector.multi_reduction <maximumf>, %79, %cst_24 [1] : vector<4x4xf32> to vector<4xf32>
    %81 = vector.shape_cast %80 : vector<4xf32> to vector<4x1xf32>
    %82 = vector.broadcast %81 : vector<4x1xf32> to vector<4x4xf32>
    %83 = arith.subf %79, %82 : vector<4x4xf32>
    %84 = math.exp %83 : vector<4x4xf32>
    %cst_25 = arith.constant dense<0.000000e+00> : vector<4xf32>
    %85 = vector.multi_reduction <add>, %84, %cst_25 [1] : vector<4x4xf32> to vector<4xf32>
    %86 = vector.shape_cast %85 : vector<4xf32> to vector<4x1xf32>
    %87 = arith.truncf %84 : vector<4x4xf32> to vector<4x4xbf16>
    %cst_26 = arith.constant dense<0.000000e+00> : vector<4x128xf32>
    %88 = tpu.matmul %87, %76, %cst_26 {dimension_numbers = #tpu.dot_dimension_numbers<[1], [0], [0], [1], [0, 0, 1, 1], [], []>} : vector<4x4xbf16>, vector<4x128xbf16>, vector<4x128xf32> -> vector<4x128xf32>
    %89 = tpu.reciprocal %86 {approx = true} : vector<4x1xf32> -> vector<4x1xf32>
    %90 = vector.broadcast %89 : vector<4x1xf32> to vector<4x128xf32>
    %91 = arith.mulf %88, %90 : vector<4x128xf32>
    %c0_27 = arith.constant 0 : index
    %c0_28 = arith.constant 0 : index
    %c128 = arith.constant 128 : index
    %92 = vector.load %arg7[%c0_27, %c0_28, %c128] : memref<1x4x256xf32, #tpu.memory_space<vmem>>, vector<1x4x128xf32>
    %93 = vector.shape_cast %92 : vector<1x4x128xf32> to vector<4x128xf32>
    %94 = vector.shape_cast %91 : vector<4x128xf32> to vector<1x4x128xf32>
    tpu.vector_store %arg7[%c0_27, %c0_28, %c128], %94 {strides = array<i32>} : memref<1x4x256xf32, #tpu.memory_space<vmem>>, vector<1x4x128xf32>,
    return
  }
  func.func @transform_0(%arg0: i32) -> (i32, i32, i32) {
    %c0_i32 = arith.constant 0 : i32
    %c0_i32_0 = arith.constant 0 : i32
    %c0_i32_1 = arith.constant 0 : i32
    return %arg0, %c0_i32, %c0_i32_0 : i32, i32, i32
  }
  func.func @transform_1(%arg0: i32) -> (i32, i32, i32) {
    %c0_i32 = arith.constant 0 : i32
    %c0_i32_0 = arith.constant 0 : i32
    %c0_i32_1 = arith.constant 0 : i32
    return %arg0, %c0_i32, %c0_i32_0 : i32, i32, i32
  }
  func.func @transform_2(%arg0: i32) -> (i32, i32) {
    %c0_i32 = arith.constant 0 : i32
    %c0_i32_0 = arith.constant 0 : i32
    %c0_i32_1 = arith.constant 0 : i32
    return %c0_i32, %c0_i32_0 : i32, i32
  }
  func.func @transform_3(%arg0: i32) -> (i32, i32) {
    %c0_i32 = arith.constant 0 : i32
    %c0_i32_0 = arith.constant 0 : i32
    %c0_i32_1 = arith.constant 0 : i32
    return %c0_i32, %c0_i32_0 : i32, i32
  }
  func.func @transform_4(%arg0: i32) -> (i32, i32) {
    %c0_i32 = arith.constant 0 : i32
    %c0_i32_0 = arith.constant 0 : i32
    %c0_i32_1 = arith.constant 0 : i32
    return %c0_i32, %c0_i32_0 : i32, i32
  }
  func.func @transform_5(%arg0: i32) -> (i32, i32) {
    %c0_i32 = arith.constant 0 : i32
    %c0_i32_0 = arith.constant 0 : i32
    %c0_i32_1 = arith.constant 0 : i32
    return %c0_i32, %c0_i32_0 : i32, i32
  }
  func.func @transform_6(%arg0: i32) -> (i32, i32, i32) {
    %c0_i32 = arith.constant 0 : i32
    %c0_i32_0 = arith.constant 0 : i32
    %c0_i32_1 = arith.constant 0 : i32
    return %arg0, %c0_i32, %c0_i32_0 : i32, i32, i32
  }
}

</mosaic_0001>

<bundles_post_ra>
// kernel: cross_multi_attention_forward.1
= control target key start
LH: loop header
LB: loop body
LE: loop exit
PB: predicated region body
PF: predicated region fallthrough
CT: control target
= control target key end

     0   :  { %s1272_s21 = smov 0   ;;  %s1553_s0 = inlined_call_operand.vmem [shape: bf16[2,4,256], index: 0, kind: input, shape index: {}]   ;;  %s1554_s1 = inlined_call_operand.vmem [shape: bf16[2,36,256], index: 1, kind: input, shape index: {}]   ;;  %s1555_s2 = inlined_call_operand.vmem [shape: bf16[256,256], index: 2, kind: input, shape index: {}]   ;;  %s1556_s3 = inlined_call_operand.vmem [shape: f32[1,256], index: 3, kind: input, shape index: {}]   ;;  %s1557_s4 = inlined_call_operand.vmem [shape: bf16[8,36], index: 4, kind: input, shape index: {}]   ;;  %s1558_s5 = inlined_call_operand.vmem [shape: f32[1,512], index: 5, kind: input, shape index: {}]   ;;  %s1559_s6 = inlined_call_operand.vmem [shape: f32[2,4,256], index: 6, kind: output, shape index: {}]  }
   0x1 LB: > { %s1059_s22 = sadd.s32 4294967295, %s1231_s21   ;;  %p1063_p0 = scmp.ge.s32.totalorder %s1231_s21, 1  ;;  %s1231_s21 = sphi %s1272_s21, %s16_s21  }
   0x2   : > { %p222_p1 = scmp.lt.s32.totalorder %s1231_s21, 3 }
   0x4   : > { %p223_p2 = pnand %p1063_p0, %p222_p1 }
   0x5   : > { %p257_p3 = scmp.lt.s32.totalorder (!%p223_p2), %s1059_s22, 1  ;;  %v1233_v0 = vmov (!%p223_p2), 0   ;;  %v1169_v1 = vld [vmem:[%s1555_s2 + $0x4] ss:$8 sps:$4 sm:$0xff] (!%p223_p2)   ;;  %v1171_v2 = vld [vmem:[%s1555_s2] ss:$8 sps:$4 sm:$0xff] (!%p223_p2)   ;;  %v308_v58 = vlaneseq (!%p223_p2) }
   0x6   : > { %226 = sbr.rel (%p223_p2) target bundleno = 1349 (0x545), region = 44  ;;  %606 = vmatprep.mubr.bf16.mxu1 (!%p223_p2), %v1233_v0  ;;  %489 = vmatprep.subr.bf16.mxu0 (!%p223_p2), %v1169_v1  ;;  %v1172_v3 = vld [vmem:[%s1555_s2 + $0x14] ss:$8 sps:$4 sm:$0xff] (!%p223_p2)   ;;  %v1174_v4 = vld [vmem:[%s1555_s2 + $0x10] ss:$8 sps:$4 sm:$0xff] (!%p223_p2)   ;;  %vm567_vm0 = vcmask (!%p223_p2), 1041408  }
   0x7   : > { %490 = vmatpush1.bf16.msra.mxu0 (!%p223_p2), %v1171_v2  ;;  %v1175_v5 = vld [vmem:[%s1555_s2 + $0x24] ss:$8 sps:$4 sm:$0xff] (!%p223_p2)   ;;  %v1177_v6 = vld [vmem:[%s1555_s2 + $0x20] ss:$8 sps:$4 sm:$0xff] (!%p223_p2)   ;;  %v1178_v11 = vld [vmem:[%s1555_s2 + $0x34] ss:$8 sps:$4 sm:$0xff] (!%p223_p2)  }
   0x8   : > { %491 = vmatprep.subr.bf16.mxu0 (!%p223_p2), %v1172_v3  ;;  %v1180_v15 = vld [vmem:[%s1555_s2 + $0x30] ss:$8 sps:$4 sm:$0xff] (!%p223_p2)   ;;  %v1181_v16 = vld [vmem:[%s1555_s2 + $0x44] ss:$8 sps:$4 sm:$0xff] (!%p223_p2)   ;;  %v1183_v18 = vld [vmem:[%s1555_s2 + $0x40] ss:$8 sps:$4 sm:$0xff] (!%p223_p2)  }
   0x9   : > { %v1184_v19 = vld [vmem:[%s1555_s2 + $0x54] ss:$8 sps:$4 sm:$0xff] (!%p223_p2)   ;;  %v532_v20 = vld [vmem:[%s1557_s4] sm:$0xf] (!%p223_p2)  ;;  %vm563_vm1 = vcmask (!%p223_p2), 293888   ;;  %v1234_v45 = vmov (!%p223_p2), 0.0  }
   0xa   : > { %v1186_v21 = vld [vmem:[%s1555_s2 + $0x50] ss:$8 sps:$4 sm:$0xff] (!%p223_p2)   ;;  %v1187_v22 = vld [vmem:[%s1555_s2 + $0x64] ss:$8 sps:$4 sm:$0xff] (!%p223_p2)   ;;  %v1189_v23 = vld [vmem:[%s1555_s2 + $0x60] ss:$8 sps:$4 sm:$0xff] (!%p223_p2)  }
   0xb   : > { %492 = vmatpush1.bf16.msra.mxu0 (!%p223_p2), %v1174_v4  ;;  %v1190_v24 = vld [vmem:[%s1555_s2 + $0x74] ss:$8 sps:$4 sm:$0xff] (!%p223_p2)   ;;  %v1192_v27 = vld [vmem:[%s1555_s2 + $0x70] ss:$8 sps:$4 sm:$0xff] (!%p223_p2)   ;;  %v1193_v28 = vld [vmem:[%s1555_s2 + $0x84] ss:$8 sps:$4 sm:$0xff] (!%p223_p2)  }
   0xc   : > { %493 = vmatprep.subr.bf16.mxu0 (!%p223_p2), %v1175_v5  ;;  %v1195_v29 = vld [vmem:[%s1555_s2 + $0x80] ss:$8 sps:$4 sm:$0xff] (!%p223_p2)   ;;  %v1196_v30 = vld [vmem:[%s1555_s2 + $0x94] ss:$8 sps:$4 sm:$0xff] (!%p223_p2)   ;;  %v1198_v31 = vld [vmem:[%s1555_s2 + $0x90] ss:$8 sps:$4 sm:$0xff] (!%p223_p2)  }
   0xd   : > { %s1561_s22 = smov (!%p257_p3, %s1059_s22), 1  ;;  %v1199_v32 = vld [vmem:[%s1555_s2 + $0xa4] ss:$8 sps:$4 sm:$0xff]   ;;  %v1201_v33 = vld [vmem:[%s1555_s2 + $0xa0] ss:$8 sps:$4 sm:$0xff]   ;;  %s1235_s7 = smov 64  }
   0xe   : > { %s1148_s29 = smul.u32 40, %s1561_s22  ;;  %v1202_v34 = vld [vmem:[%s1555_s2 + $0xb4] ss:$8 sps:$4 sm:$0xff]   ;;  %v1204_v35 = vld [vmem:[%s1555_s2 + $0xb0] ss:$8 sps:$4 sm:$0xff]   ;;  %vm1236_vm2 = vmmov 0  }
   0xf   : > { %494 = vmatpush1.bf16.msra.mxu0 %v1177_v6  ;;  %v1205_v36 = vld [vmem:[%s1555_s2 + $0xc4] ss:$8 sps:$4 sm:$0xff]   ;;  %v1207_v37 = vld [vmem:[%s1555_s2 + $0xc0] ss:$8 sps:$4 sm:$0xff]   ;;  %v1208_v38 = vld [vmem:[%s1555_s2 + $0xd4] ss:$8 sps:$4 sm:$0xff]  }
  0x10   : > { %s266_s12 = scalar_lea.vmem %s1554_s1, %s1148_s29  ;;  %495 = vmatprep.subr.bf16.mxu0 %v1178_v11  ;;  %s1114_s29 = sshll.u32 %s1561_s22, 2  ;;  %v1210_v39 = vld [vmem:[%s1555_s2 + $0xd0] ss:$8 sps:$4 sm:$0xff]   ;;  %v1211_v40 = vld [vmem:[%s1555_s2 + $0xe4] ss:$8 sps:$4 sm:$0xff]   ;;  %v1431_v60 = vshrl.u32 %v308_v58, 7 }
  0x11   : > { %v1161_v7 = vld [vmem:[%s266_s12 + $0x4] ss:$8 sps:$4 sm:$0xff]   ;;  %v1163_v8 = vld [vmem:[%s266_s12] ss:$8 sps:$4 sm:$0xff]   ;;  %v1164_v9 = vld [vmem:[%s266_s12 + $0x14] ss:$8 sps:$4 sm:$0xff]  }
  0x12   : > { %574 = vmatprep.subr.bf16.mxu1 %v1161_v7  ;;  %v537_v10 = vld [vmem:[%s266_s12 + $0x20] sm:$0x33]  ;;  %v1166_v12 = vld [vmem:[%s266_s12 + $0x10] ss:$8 sps:$4 sm:$0xff]   ;;  %s261_s12 = scalar_lea.vmem %s1553_s0, %s1114_s29  ;;  %v1214_v42 = vld [vmem:[%s1555_s2 + $0xf4] ss:$8 sps:$4 sm:$0xff]  }
  0x13   : > { %575 = vmatpush1.bf16.msra.mxu1 %v1163_v8  ;;  %v1107_v13 = vcombine.high %v537_v10, %v537_v10  ;;  %v1106_v14 = vcombine.low %v537_v10, %v537_v10  ;;  %496 = vmatpush1.bf16.msra.mxu0 %v1180_v15  ;;  %v1069_v25 = vld.sshfl [vmem:[%s261_s12] sm:$0x33 pattern:$0x76325410]  ;;  %v1216_v43 = vld [vmem:[%s1555_s2 + $0xf0] ss:$8 sps:$4 sm:$0xff]  }
  0x14   : > { %576 = vmatprep.subr.bf16.mxu1 %v1164_v9  ;;  %497 = vmatprep.subr.bf16.mxu0 %v1181_v16  ;;  %v326_v26 = vcombine.high %v1069_v25, %v1069_v25  ;;  %v1213_v41 = vld [vmem:[%s1555_s2 + $0xe0] ss:$8 sps:$4 sm:$0xff]   ;;  %v314_v61 = vsub.s32 1, %v1431_v60  ;;  %vm638_vm3 = vcmask 523264   ;;  %vm746_vm4 = vcmask 1040384   ;;  %s1115_s12 = sshll.u32 %s1561_s22, 3 }
  0x15   : > { %v569_v17 = vsel %vm567_vm0, %v1106_v14, 0  ;;  %v306_v63 = vld [vmem:[%s1556_s3] sm:$0x3]  ;;  %vm755_vm5 = vcmask 1042432   ;;  %vm831_vm6 = vcmask 27648   ;;  %vm842_vm7 = vcmask 31744   ;;  %s1531_s15 = scalar_lea.vmem %s1559_s6, %s1115_s12 }
  0x16   : > { %521 = vmatprep.mubr.bf16.mxu0 %v326_v26  ;;  %v315_v0 = vrot.slane %v306_v63, %v314_v61  ;;  %v1463_v15 = vld [vmem:[%s1558_s5] sm:$0xf] }
  0x17   : > { %577 = vmatpush1.bf16.msra.mxu1 %v1166_v12  ;;  %498 = vmatpush1.bf16.msra.mxu0 %v1183_v18  ;;  %v310_v12 = vsub.s32 0, %v1431_v60 }
  0x18   : > { %1108 = vmatprep.subr.msk.bf16.mxu1 %vm567_vm0, %v1107_v13  ;;  %499 = vmatprep.subr.bf16.mxu0 %v1184_v19 }
  0x19   : > { %v311_v26 = vrot.slane %v306_v63, %v310_v12 }
  0x1b   : > { %579 = vmatpush1.bf16.msra.mxu1 %v569_v17  ;;  %500 = vmatpush1.bf16.msra.mxu0 %v1186_v21  ;;  %v765_v21 = vrot.slane %v1463_v15, %v310_v12 }
  0x1c   : > { %501 = vmatprep.subr.bf16.mxu0 %v1187_v22  ;;  %1124 = vmatprep.subr.bf16.mxu1 %v1234_v45 }
  0x1e   : > { %1109 = vmatmul.mubr.msk.bf16.vlgmr.msra.gmra.mrb[0].mxu1 %vm563_vm1, %v532_v20 }
  0x1f   : > { %502 = vmatpush1.bf16.msra.mxu0 %v1189_v23  ;;  %1126 = vmatprep.mubr.msk.bf16.mxu1 %vm1236_vm2, %v1234_v45 }
  0x20   : > { %503 = vmatprep.subr.bf16.mxu0 %v1190_v24 }
  0x23   : > { %504 = vmatpush1.bf16.msra.mxu0 %v1192_v27 }
  0x24   : > { %505 = vmatprep.subr.bf16.mxu0 %v1193_v28 }
  0x27   : > { %506 = vmatpush1.bf16.msra.mxu0 %v1195_v29 }
  0x28   : > { %507 = vmatprep.subr.bf16.mxu0 %v1196_v30 }
  0x2b   : > { %508 = vmatpush1.bf16.msra.mxu0 %v1198_v31 }
  0x2c   : > { %509 = vmatprep.subr.bf16.mxu0 %v1199_v32 }
  0x2f   : > { %510 = vmatpush1.bf16.msra.mxu0 %v1201_v33 }
  0x30   : > { %511 = vmatprep.subr.bf16.mxu0 %v1202_v34 }
  0x33   : > { %512 = vmatpush1.bf16.msra.mxu0 %v1204_v35  ;;  %v772_v35 = vsub.s32 2, %v1431_v60 }
  0x34   : > { %513 = vmatprep.subr.bf16.mxu0 %v1205_v36 }
  0x37   : > { %514 = vmatpush1.bf16.msra.mxu0 %v1207_v37 }
  0x38   : > { %515 = vmatprep.subr.bf16.mxu0 %v1208_v38 }
  0x3b   : > { %516 = vmatpush1.bf16.msra.mxu0 %v1210_v39 }
  0x3c   : > { %517 = vmatprep.subr.bf16.mxu0 %v1211_v40 }
  0x3f   : > { %518 = vmatpush1.bf16.msra.mxu0 %v1213_v41 }
  0x40   : > { %519 = vmatprep.subr.bf16.mxu0 %v1214_v42  ;;  %v773_v42 = vrot.slane %v1463_v15, %v772_v35 }
  0x43   : > { %520 = vmatpush1.bf16.msra.mxu0 %v1216_v43 }
  0x46   : > { %522 = vmatmul.mubr.bf16.vlgmr.msra.gmra.mrb[0].mxu0 %v1069_v25 }
  0xf1   : > { %v1391_v44 = vpop.f32.mrb[0].mxu1 }
  0xf2   : > { %643 = vrot.lane.b32.xlu0 %v1391_v44, %s1235_s7  ;;  %v1396_v46 = vpop.f32.mrb[1].mxu1  ;;  %v616_v47 = vrot.slane %v1391_v44, 1  ;;  %v626_v51 = vrot.slane %v1391_v44, 4  ;;  %v628_v53 = vrot.slane %v1391_v44, 5  ;;  %v620_v55 = vrot.slane %v1391_v44, 2 }
  0xf3   : > { %v612_v48 = vpop.f32.mrb[2].mxu1  ;;  %v664_v49 = vrot.slane %v1396_v46, 1  ;;  %v676_v52 = vrot.slane %v1396_v46, 5  ;;  %v674_v54 = vrot.slane %v1396_v46, 4  ;;  %v670_v56 = vrot.slane %v1396_v46, 3 }
  0xf4   : > { %617 = vrot.lane.b32.xlu1 %v616_v47, %s1235_s7  ;;  %v613_v50 = vpop.f32.mrb[3].mxu1  ;;  %v622_v57 = vrot.slane %v1391_v44, 3  ;;  %v668_v59 = vrot.slane %v1396_v46, 2  ;;  %v632_v62 = vrot.slane %v1391_v44, 6  ;;  %v634_v1 = vrot.slane %v1391_v44, 7 }
  0xf5   : > { %v680_v6 = vrot.slane %v1396_v46, 6 }
  0xf6   : > { %665 = vrot.lane.b32.xlu0 %v664_v49, %s1235_s7 }
  0xf8   : > { %690 = vrot.lane.b32.xlu1 %v1396_v46, %s1235_s7 }
  0xfc   : > { %651 = vrot.lane.b32.xlu1 %v626_v51, %s1235_s7 }
 0x100   : > { %677 = vrot.lane.b32.xlu1 %v676_v52, %s1235_s7 }
 0x104   : > { %629 = vrot.lane.b32.xlu1 %v628_v53, %s1235_s7 }
 0x108   : > { %698 = vrot.lane.b32.xlu1 %v674_v54, %s1235_s7 }
 0x10c   : > { %647 = vrot.lane.b32.xlu1 %v620_v55, %s1235_s7 }
 0x110   : > { %671 = vrot.lane.b32.xlu1 %v670_v56, %s1235_s7 }
 0x114   : > { %623 = vrot.lane.b32.xlu1 %v622_v57, %s1235_s7 }
 0x118   : > { %694 = vrot.lane.b32.xlu1 %v668_v59, %s1235_s7 }
 0x119   : > { %v523_v2 = vpop.f32.mrb[0].mxu0 }
 0x11a   : > { %v525_v3 = vpop.f32.mrb[1].mxu0  ;;  %v524_v30 = vadd.f32 %v523_v2, %v311_v26 }
 0x11b   : > { %v1450_v4 = vadd.f32 %v525_v3, %v315_v0  ;;  %v527_v5 = vpop.f32.mrb[2].mxu0 }
 0x11c   : > { %655 = vrot.lane.b32.xlu1 %v632_v62, %s1235_s7  ;;  %v528_v7 = vpop.f32.mrb[3].mxu0  ;;  %v530_v32 = vpack.c.bf16 %v524_v30, %v524_v30 }
 0x120   : > { %635 = vrot.lane.b32.xlu1 %v634_v1, %s1235_s7 }
 0x124   : > { %702 = vrot.lane.b32.xlu1 %v680_v6, %s1235_s7 }
 0x164   : > { %v644_v8 = vpop.permute.xlu0 %643 }
 0x165   : > { %v659_v9 = vsel %vm638_vm3, %v644_v8, %v616_v47 }
 0x166   : > { %v618_v10 = vpop.permute.xlu1 %617  ;;  %v714_v11 = vrot.slane %v659_v9, 7 }
 0x167   : > { %v639_v13 = vsel %vm638_vm3, %v1391_v44, %v618_v10  ;;  %v769_v44 = vrot.slane %v1463_v15, %v314_v61  ;;  %v531_v61 = vpack.c.bf16 %v1450_v4, %v1450_v4 }
 0x168   : > { %v666_v14 = vpop.permute.xlu0 %665  ;;  %v747_v19 = vsel %vm746_vm4, %v639_v13, %v714_v11 }
 0x169   : > { %v686_v16 = vsel %vm638_vm3, %v1396_v46, %v666_v14 }
 0x16a   : > { %v726_v17 = vrot.slane %v686_v16, 6  ;;  %v691_v18 = vpop.permute.xlu1 %690 }
 0x16b   : > { %v706_v20 = vsel %vm638_vm3, %v691_v18, %v664_v49 }
 0x16c   : > { %v751_v22 = vsel %vm567_vm0, %v747_v19, %v726_v17  ;;  %v738_v23 = vrot.slane %v706_v20, 5 }
 0x16e   : > { %v756_v24 = vsel %vm755_vm5, %v751_v22, %v738_v23  ;;  %v652_v25 = vpop.permute.xlu1 %651 }
 0x16f   : > { %v782_v27 = vadd.f32 %v765_v21, %v756_v24  ;;  %v661_v31 = vsel %vm638_vm3, %v652_v25, %v628_v53 }
 0x170   : > { %v716_v36 = vrot.slane %v661_v31, 7 }
 0x171   : > { %v786_v28 = vpack.c.bf16 %v782_v27, %v782_v27 }
 0x172   : > { %v678_v29 = vpop.permute.xlu1 %677 }
 0x173   : > { %1125 = vmatpush3.bf16.xpose.msra.mxu1 %v786_v28  ;;  %v688_v37 = vsel %vm638_vm3, %v674_v54, %v678_v29 }
 0x174   : > { %1130 = vmatprep.subr.bf16.mxu1 %v1234_v45  ;;  %v728_v40 = vrot.slane %v688_v37, 6 }
 0x176   : > { %v630_v33 = vpop.permute.xlu1 %629 }
 0x177   : > { %v641_v34 = vsel %vm638_vm3, %v626_v51, %v630_v33 }
 0x178   : > { %v749_v38 = vsel %vm746_vm4, %v641_v34, %v716_v36 }
 0x179   : > { %v753_v47 = vsel %vm567_vm0, %v749_v38, %v728_v40 }
 0x17a   : > { %v699_v39 = vpop.permute.xlu1 %698  ;;  %1127 = vmatmul.mubr.bf16.vlgmr.msra.gmra.mrb[4].mxu1 %v530_v32 }
 0x17b   : > { %v708_v41 = vsel %vm638_vm3, %v699_v39, %v676_v52  ;;  %1132 = vmatprep.mubr.msk.bf16.mxu1 %vm1236_vm2, %v1234_v45  ;;  %v682_v39 = vrot.slane %v1396_v46, 7 }
 0x17c   : > { %v740_v43 = vrot.slane %v708_v41, 5 }
 0x17e   : > { %v758_v48 = vsel %vm755_vm5, %v753_v47, %v740_v43  ;;  %v648_v49 = vpop.permute.xlu1 %647 }
 0x17f   : > { %v784_v50 = vadd.f32 %v773_v42, %v758_v48  ;;  %v776_v42 = vsub.s32 3, %v1431_v60 }
 0x181   : > { %v788_v51 = vpack.c.bf16 %v784_v50, %v784_v50 }
 0x182   : > { %v672_v53 = vpop.permute.xlu1 %671 }
 0x183   : > { %v847_v54 = vsel %vm567_vm0, %v788_v51, 0  ;;  %v687_v20 = vsel %vm638_vm3, %v668_v59, %v672_v53  ;;  %v777_v51 = vrot.slane %v1463_v15, %v776_v42 }
 0x184   : > { %1131 = vmatpush3.bf16.msra.mxu1 %v847_v54 }
 0x185   : > { %1136 = vmatprep.subr.bf16.mxu1 %v1234_v45 }
 0x186   : > { %v624_v52 = vpop.permute.xlu1 %623 }
 0x18a   : > { %v695_v58 = vpop.permute.xlu1 %694 }
 0x18b   : > { %v707_v17 = vsel %vm638_vm3, %v695_v58, %v670_v56 }
 0x18c   : > { %v739_v22 = vrot.slane %v707_v17, 5 }
 0x18e   : > { %v656_v63 = vpop.permute.xlu1 %655 }
 0x18f   : > { %v662_v0 = vsel %vm638_vm3, %v656_v63, %v634_v1  ;;  %v660_v1 = vsel %vm638_vm3, %v648_v49, %v622_v57  ;;  %v727_v57 = vrot.slane %v687_v20, 6 }
 0x190   : > { %v717_v2 = vrot.slane %v662_v0, 7  ;;  %v715_v19 = vrot.slane %v660_v1, 7 }
 0x192   : > { %v636_v3 = vpop.permute.xlu1 %635 }
 0x193   : > { %v642_v5 = vsel %vm638_vm3, %v632_v62, %v636_v3  ;;  %v640_v62 = vsel %vm638_vm3, %v620_v55, %v624_v52 }
 0x194   : > { %v1497_v7 = vsel %vm746_vm4, %v642_v5, %v717_v2  ;;  %v748_v21 = vsel %vm746_vm4, %v640_v62, %v715_v19 }
 0x195   : > { %v752_v55 = vsel %vm567_vm0, %v748_v21, %v727_v57 }
 0x196   : > { %v757_v23 = vsel %vm755_vm5, %v752_v55, %v739_v22  ;;  %v703_v27 = vpop.permute.xlu1 %702 }
 0x197   : > { %v783_v56 = vadd.f32 %v769_v44, %v757_v23  ;;  %v709_v47 = vsel %vm638_vm3, %v703_v27, %v682_v39 }
 0x198   : > { %v741_v53 = vrot.slane %v709_v47, 5 }
 0x199   : > { %v787_v26 = vpack.c.bf16 %v783_v56, %v783_v56 }
 0x24d   : > { %v824_v8 = vpop.f32.mrb[4].mxu1 }
 0x24e   : > { %v830_v9 = vmul.f32 0.0625, %v824_v8  ;;  %v1128_v10 = vpop.f32.mrb[5].mxu1 }
 0x24f   : > { %v827_v11 = vpop.f32.mrb[6].mxu1 }
 0x250   : > { %v1129_v12 = vpop.f32.mrb[7].mxu1  ;;  %v832_v13 = vsel %vm831_vm6, %v830_v9, -inf }
 0x251   : > { %833 = vmax.xlane.f32.xlu0 %v832_v13 }
 0x2de   : > { %v834_v14 = vpop.xlane.xlu0 %833 }
 0x2df   : > { %v835_v16 = vsub.f32 %v830_v9, %v834_v14 }
 0x2e1   : > { %v836_v18 = vmul.f32 1.442695, %v835_v16 }
 0x2e3   : > { %1217 = vpow2.f32 %v836_v18 }
 0x2ed   : > { %v1218_v24 = vpop.eup %1217 }
 0x2ee   : > { %v838_v25 = vsel %vm831_vm6, %v1218_v24, 0.0  ;;  %v841_v59 = vpack.c.bf16 %v1218_v24, %v1218_v24 }
 0x2ef   : > { %839 = vadd.xlane.f32.xlu1 %v838_v25 }
 0x2f0   : > { %1133 = vmatmul.mubr.msk.bf16.vlgmr.msra.gmra.mrb[8].mxu1 %vm842_vm7, %v841_v59 }
 0x2f1   : > { %1137 = vmatpush3.bf16.xpose.msra.mxu1 %v787_v26  ;;  %1138 = vmatprep.mubr.msk.bf16.mxu1 %vm1236_vm2, %v1234_v45 }
 0x2f2   : > { %1142 = vmatprep.subr.bf16.mxu1 %v1234_v45 }
 0x2f8   : > { %1139 = vmatmul.mubr.bf16.vlgmr.msra.gmra.mrb[12].mxu1 %v531_v61 }
 0x2f9   : > { %1144 = vmatprep.mubr.msk.bf16.mxu1 %vm1236_vm2, %v1234_v45 }
 0x37c   : > { %v840_v28 = vpop.xlane.xlu1 %839 }
 0x37d   : > { %1219 = vrcp.f32 %v840_v28 }
 0x387   : > { %v1220_v29 = vpop.eup %1219 }
 0x3c3   : > { %v883_v30 = vpop.f32.mrb[8].mxu1 }
 0x3c4   : > { %v890_v31 = vmul.f32 %v1220_v29, %v883_v30  ;;  %v1134_v32 = vpop.f32.mrb[9].mxu1 }
 0x3c5   : > { %v886_v33 = vpop.f32.mrb[10].mxu1 }
 0x3c6   : > { %891 = vst [vmem:[%s1531_s15] sm:$0xf] %v890_v31  ;;  %v1135_v4 = vpop.f32.mrb[11].mxu1 }
 0x3cb   : > { %v926_v34 = vpop.f32.mrb[12].mxu1 }
 0x3cc   : > { %v932_v35 = vmul.f32 0.0625, %v926_v34  ;;  %v1140_v45 = vpop.f32.mrb[13].mxu1 }
 0x3cd   : > { %v929_v36 = vpop.f32.mrb[14].mxu1 }
 0x3ce   : > { %v1141_v37 = vpop.f32.mrb[15].mxu1  ;;  %v933_v38 = vsel %vm831_vm6, %v932_v35, -inf }
 0x3cf   : > { %934 = vmax.xlane.f32.xlu0 %v933_v38 }
 0x3e5   : > { %683 = vrot.lane.b32.xlu0 %v682_v39, %s1235_s7 }
 0x45c   : > { %v935_v40 = vpop.xlane.xlu0 %934 }
 0x45d   : > { %v936_v41 = vsub.f32 %v932_v35, %v935_v40 }
 0x45f   : > { %v937_v43 = vmul.f32 1.442695, %v936_v41 }
 0x460   : > { %v684_v48 = vpop.permute.xlu0 %683 }
 0x461   : > { %1221 = vpow2.f32 %v937_v43  ;;  %v689_v49 = vsel %vm638_vm3, %v680_v6, %v684_v48 }
 0x462   : > { %v729_v50 = vrot.slane %v689_v49, 6 }
 0x464   : > { %v754_v54 = vsel %vm567_vm0, %v1497_v7, %v729_v50 }
 0x465   : > { %v759_v52 = vsel %vm755_vm5, %v754_v54, %v741_v53 }
 0x466   : > { %v785_v58 = vadd.f32 %v777_v51, %v759_v52 }
 0x468   : > { %v789_v60 = vpack.c.bf16 %v785_v58, %v785_v58 }
 0x46a   : > { %v947_v63 = vsel %vm567_vm0, %v789_v60, 0 }
 0x46b   : > { %v1222_v0 = vpop.eup %1221  ;;  %1143 = vmatpush3.bf16.msra.mxu1 %v947_v63 }
 0x46c   : > { %v939_v46 = vsel %vm831_vm6, %v1222_v0, 0.0  ;;  %v942_v2 = vpack.c.bf16 %v1222_v0, %v1222_v0 }
 0x46d   : > { %940 = vadd.xlane.f32.xlu0 %v939_v46 }
 0x46e   : > { %1145 = vmatmul.mubr.msk.bf16.vlgmr.msra.gmra.mrb[16].mxu1 %vm842_vm7, %v942_v2 }
 0x4fa   : > { %v941_v6 = vpop.xlane.xlu0 %940 }
 0x4fb   : > { %1223 = vrcp.f32 %v941_v6 }
 0x505   : > { %v1224_v15 = vpop.eup %1223 }
 0x541   : > { %v983_v3 = vpop.f32.mrb[16].mxu1 }
 0x542   : > { %v990_v5 = vmul.f32 %v1224_v15, %v983_v3  ;;  %v1146_v7 = vpop.f32.mrb[17].mxu1 }
 0x543   : > { %v986_v8 = vpop.f32.mrb[18].mxu1 }
 0x544   : > { %991 = vst [vmem:[%s1531_s15 + $0x4] sm:$0xf] %v990_v5  ;;  %v1147_v9 = vpop.f32.mrb[19].mxu1 }
 0x545 PF: > { %s16_s21 = sadd.s32 1, %s1231_s21  }
 0x546   : > { %p13_p4 = scmp.ge.s32.totalorder %s16_s21, 4  }
 0x548   :  { %15 = sbr.rel (!%p13_p4) target bundleno = 1 (0x1), region = 77 }

</bundles_post_ra>
